<compile_context>
chip_gen: v5e
topology: v5e:2x2
jax: 0.10.0
libtpu: 0.0.40
codegen_flags: <defaults>
</compile_context>

<pallas_src>
import numpy as np
import jax
import jax.numpy as jnp
from jax import lax
from jax.experimental import pallas as pl
from jax.experimental.pallas import tpu as pltpu

F32 = jnp.float32


# ----------------------------------------------------------------------------
# Fused kernel: Euler ODE solve + decode-mean + GRU_unit update, one grid step
# per unique time point, prev_y carried across steps in VMEM scratch.
# ----------------------------------------------------------------------------
def _fused_ode_rnn_kernel(
        # scalar prefetch (SMEM)
        n_steps_ref,                                   # (U,) int32  Euler steps per segment
        # per-step SMEM tables
        dt_ref,                                        # (U,) f32    Euler dt per segment
        invn_ref,                                      # (U,) f32    1 / max(n_steps, 1)
        # per-step pipelined VMEM blocks
        x_ref,                                         # (1, B, 2*D) fetched_x * update_mask
        umask_ref,                                     # (1, B, 1)   update mask
        # resident weights (VMEM, DMA'd once — constant index maps)
        w1y_ur_ref, w1x_ref, b1_ur_ref, b1_n_ref,      # packed GRU layer 1
        w2_ur_ref, b2_ur_ref,                          # block-diag update|reset layer 2
        wn1y_ref, wn2_ref, bn2_ref,                    # new-state net
        wo1_ref, bo1_ref, wo2_ref, bo2_ref,            # ODE function (tanh MLP)
        wd_ref, bd_ref,                                # linear decoder
        # outputs
        vol_ref,                                       # (1, B, O)   per-step decode-mean
        y_out_ref,                                     # (B, L)      final latent state
        # scratch
        prev_y_ref):                                   # (B, L)      carried latent state
    i = pl.program_id(0)
    L = prev_y_ref.shape[-1]
    n_units = wn1y_ref.shape[-1]

    @pl.when(i == 0)
    def _():
        prev_y_ref[...] = jnp.zeros_like(prev_y_ref)

    y0 = prev_y_ref[...]                               # (B, L)

    # ---------------- Euler ODE solve fused with the running state sum --------------
    n_steps = n_steps_ref[i]
    dt = dt_ref[i]
    wo1 = wo1_ref[...]; bo1 = bo1_ref[...]
    wo2 = wo2_ref[...]; bo2 = bo2_ref[...]

    def euler_body(_, carry):
        y, s = carry
        s = s + y                                      # sum over states 0 .. n_steps-1
        h = jnp.tanh(jnp.dot(y, wo1, preferred_element_type=F32) + bo1)
        dy = jnp.dot(h, wo2, preferred_element_type=F32) + bo2
        return y + dt * dy, s

    y_last, y_sum = lax.fori_loop(0, n_steps, euler_body, (y0, jnp.zeros_like(y0)))

    # decoder is linear:  mean_t(dec(sol[:, :-1])) == dec(mean_t(sol[:, :-1]))
    # TODO(synk): a segment with a single time point (n_steps == 0) yields NaN in the
    # torch reference (mean over an empty slice); here invn is 0-guarded instead.
    vol = jnp.dot(y_sum * invn_ref[i], wd_ref[...], preferred_element_type=F32) + bd_ref[...]
    vol_ref[0] = vol

    # ---------------- GRU_unit update at the observation point ----------------------
    x = x_ref[0]                                       # (B, 2*D), already masked
    half = x.shape[-1] // 2
    xv = x[:, :half]                                   # observed values
    xm = x[:, half:]                                   # observation mask

    zx = jnp.dot(xv, w1x_ref[...], preferred_element_type=F32)             # (B, 3*n_units)
    z_ur = (jnp.dot(y_last, w1y_ur_ref[...], preferred_element_type=F32)
            + zx[:, :2 * n_units] + b1_ur_ref[...])
    gates = jax.nn.sigmoid(
        jnp.dot(jnp.tanh(z_ur), w2_ur_ref[...], preferred_element_type=F32)
        + b2_ur_ref[...])                                                  # (B, 2*L)
    update_gate = gates[:, :L]
    reset_gate = gates[:, L:]

    z_n = (jnp.dot(y_last * reset_gate, wn1y_ref[...], preferred_element_type=F32)
           + zx[:, 2 * n_units:] + b1_n_ref[...])
    new_state = (jnp.dot(jnp.tanh(z_n), wn2_ref[...], preferred_element_type=F32)
                 + bn2_ref[...])

    new_y = (1.0 - update_gate) * new_state + update_gate * y_last
    obs = (jnp.sum(xm, axis=-1, keepdims=True) > 0.0).astype(F32)
    yi = obs * new_y + (1.0 - obs) * y_last

    m = umask_ref[0]                                   # (B, 1)
    prev_y_new = yi * m + y_last * (1.0 - m)
    prev_y_ref[...] = prev_y_new
    y_out_ref[...] = prev_y_new


# ----------------------------------------------------------------------------
# Encoder module
# ----------------------------------------------------------------------------
class EncoderODERNN:
    def __init__(self, latent_dim, input_dim, n_gru_units=32, ode_units=32,
                 dec_out=8, key=None):
        self.latent_dim = latent_dim
        self.input_dim = input_dim                     # value-half of the data feature dim
        self.dec_out = dec_out
        std = 0.1                                      # utils.init_network_weights: N(0,0.1), bias 0
        ks = jax.random.split(key, 9)

        def W(k, shape):
            return jax.random.normal(k, shape, F32) * std

        L, D, n = latent_dim, input_dim, n_gru_units
        cin = L + D
        # raw GRU_unit parameters (y = x @ W + b layout; synthetic init)
        wu1 = W(ks[0], (cin, n)); bu1 = jnp.zeros((1, n), F32)
        wu2 = W(ks[1], (n, L));   bu2 = jnp.zeros((1, L), F32)
        wr1 = W(ks[2], (cin, n)); br1 = jnp.zeros((1, n), F32)
        wr2 = W(ks[3], (n, L));   br2 = jnp.zeros((1, L), F32)
        wn1 = W(ks[4], (cin, n)); bn1 = jnp.zeros((1, n), F32)
        wn2 = W(ks[5], (n, L));   bn2 = jnp.zeros((1, L), F32)
        # ODE function (used by the Euler diffeq_solver)
        wo1 = W(ks[6], (L, ode_units)); bo1 = jnp.zeros((1, ode_units), F32)
        wo2 = W(ks[7], (ode_units, L)); bo2 = jnp.zeros((1, L), F32)
        # linear decoder (the `decoder` argument of forward)
        wd = W(ks[8], (L, dec_out)); bd = jnp.zeros((1, dec_out), F32)

        # ---- pack GRU weights: fewer, wider matmuls in the kernel -------------------
        w1y_ur = jnp.concatenate([wu1[:L], wr1[:L]], axis=1)              # (L, 2n)
        w1x = jnp.concatenate([wu1[L:], wr1[L:], wn1[L:]], axis=1)        # (D, 3n)
        b1_ur = jnp.concatenate([bu1, br1], axis=1)                       # (1, 2n)
        b1_n = bn1                                                        # (1, n)
        w2_ur = jnp.zeros((2 * n, 2 * L), F32)                            # block-diag [wu2; wr2]
        w2_ur = w2_ur.at[:n, :L].set(wu2).at[n:, L:].set(wr2)
        b2_ur = jnp.concatenate([bu2, br2], axis=1)                       # (1, 2L)
        wn1y = wn1[:L]                                                    # (L, n)

        self._weights = (w1y_ur, w1x, b1_ur, b1_n, w2_ur, b2_ur,
                         wn1y, wn2, bn2, wo1, bo1, wo2, bo2, wd, bd)
        self._cache = {}

    # ---- fused pallas_call, one compile per (U, B, n_dim) --------------------------
    def _run_fused(self, n_steps, dt, invn, fetched_x, umask):
        U, B, n_dim = (int(fetched_x.shape[0]), int(fetched_x.shape[1]),
                       int(fetched_x.shape[2]))
        L, O = self.latent_dim, self.dec_out
        key = (U, B, n_dim)
        if key not in self._cache:
            weight_specs = [pl.BlockSpec(w.shape, lambda i, *_: (0, 0))
                            for w in self._weights]
            grid_spec = pltpu.PrefetchScalarGridSpec(
                num_scalar_prefetch=1,                                     # n_steps (int32)
                grid=(U,),
                in_specs=[
                    pl.BlockSpec(memory_space=pltpu.MemorySpace.SMEM),     # dt table
                    pl.BlockSpec(memory_space=pltpu.MemorySpace.SMEM),     # 1/n table
                    pl.BlockSpec((1, B, n_dim), lambda i, *_: (i, 0, 0)),  # fetched_x
                    pl.BlockSpec((1, B, 1), lambda i, *_: (i, 0, 0)),      # update mask
                ] + weight_specs,
                out_specs=[
                    pl.BlockSpec((1, B, O), lambda i, *_: (i, 0, 0)),      # volume_dt
                    pl.BlockSpec((B, L), lambda i, *_: (0, 0)),            # final prev_y
                ],
                scratch_shapes=[pltpu.VMEM((B, L), F32)],
            )
            fn = pl.pallas_call(
                _fused_ode_rnn_kernel,
                grid_spec=grid_spec,
                out_shape=(jax.ShapeDtypeStruct((U, B, O), F32),
                           jax.ShapeDtypeStruct((B, L), F32)),
                compiler_params=pltpu.CompilerParams(
                    dimension_semantics=("arbitrary",)),                   # carried loop: one TC
            )
            self._cache[key] = jax.jit(fn)
        return self._cache[key](n_steps, dt, invn, fetched_x, umask, *self._weights)

    # ---- forward (mirrors Encoder_ODE_RNN.forward) ----------------------------------
    def forward(self, data, time_steps):
        data = jnp.asarray(data, F32)
        time_steps = jnp.asarray(time_steps, F32)
        n_traj, n_tp, n_dim = data.shape
        minimum_step = 1.0

        data_p = jnp.concatenate([data, jnp.zeros((n_traj, 1, n_dim), F32)], axis=1)

        # ---- host schedule: unique time points + per-segment Euler metadata ---------
        ts_np = np.asarray(time_steps)
        t_eval_total, inv = np.unique(ts_np, return_inverse=True)
        inv_np = inv.reshape(ts_np.shape)
        inverse_indices = jnp.asarray(inv_np, jnp.int32)
        U = int(t_eval_total.shape[0])

        n_steps_np = np.zeros((U,), np.int32)
        dt_np = np.zeros((U,), np.float32)
        t_i_seq = np.zeros((U,), np.float64)
        prev_t, t_i = -1.0, 0.0                        # reference hard-codes (-1, 0)
        for i in range(U):
            n_pts = int((t_i - prev_t) / minimum_step + 1)
            n_steps_np[i] = n_pts - 1
            dt_np[i] = (t_i - prev_t) / max(n_pts - 1, 1)
            t_i_seq[i] = t_i
            if i < U - 1:
                prev_t, t_i = float(t_eval_total[i]), float(t_eval_total[i + 1])
        invn_np = (1.0 / np.maximum(n_steps_np, 1)).astype(np.float32)

        # observation schedule: which trajectories update at each unique time point and
        # which (pre-gathered) data row they consume (exclusive running count).
        hit = (inv_np[:, :, None] == np.arange(U)[None, None, :]).any(axis=1)   # (B, U)
        hit[:, 0] = (ts_np == np.float32(t_i_seq[0])).any(axis=1)               # t_i = 0 at i = 0
        umask_np = hit.astype(np.float32)
        fetch_idx_np = np.concatenate(
            [np.zeros((n_traj, 1)), np.cumsum(umask_np, axis=1)[:, :-1]],
            axis=1).astype(np.int32)

        gidx = jnp.broadcast_to(jnp.asarray(fetch_idx_np)[:, :, None],
                                (n_traj, U, n_dim))
        gathered = jnp.take_along_axis(data_p, gidx, axis=1)                    # (B, U, n_dim)
        umask_bu = jnp.asarray(umask_np)                                        # (B, U)
        fetched_x = jnp.transpose(gathered * umask_bu[:, :, None], (1, 0, 2))   # (U, B, n_dim)
        umask = jnp.transpose(umask_bu)[:, :, None]                             # (U, B, 1)

        vol, prev_y = self._run_fused(jnp.asarray(n_steps_np), jnp.asarray(dt_np),
                                      jnp.asarray(invn_np), fetched_x, umask)

        volume_dt = jnp.transpose(vol, (1, 0, 2))                               # (B, U, O)
        idx = jnp.broadcast_to(inverse_indices[:, :-1, None],
                               (n_traj, n_tp - 1, volume_dt.shape[-1]))
        selected_state = jnp.take_along_axis(volume_dt[:, 1:], idx, axis=1)
        return prev_y, selected_state, time_steps[:, 1:] - time_steps[:, :-1]


# ----------------------------------------------------------------------------
if __name__ == "__main__":
    key = jax.random.PRNGKey(0)
    n_traj, n_tp = 8, 4
    latent_dim, input_half = 16, 8
    n_dim = 2 * input_half                              # values | observation mask

    k1, k2, k3 = jax.random.split(key, 3)
    values = jax.random.normal(k1, (n_traj, n_tp, input_half), F32)
    obs_mask = (jax.random.uniform(k2, (n_traj, n_tp, input_half)) < 0.7).astype(F32)
    data = jnp.concatenate([values * obs_mask, obs_mask], axis=-1)              # (8, 4, 16)

    # strictly increasing integer time stamps per trajectory (unit-spaced so linspace
    # point counts are exact; keeps torch.unique / take_along_dim semantics well-defined)
    time_steps = jnp.array([
        [0., 1., 2., 3.],
        [0., 1., 2., 4.],
        [0., 2., 3., 5.],
        [1., 2., 4., 5.],
        [0., 1., 3., 5.],
        [0., 2., 4., 5.],
        [1., 3., 4., 5.],
        [0., 1., 2., 5.],
    ], dtype=F32)                                                               # (8, 4)

    enc = EncoderODERNN(latent_dim, input_half, n_gru_units=32,
                        ode_units=32, dec_out=8, key=k3)

    prev_y, selected_state, dt = enc.forward(data, time_steps)
    jax.block_until_ready((prev_y, selected_state, dt))

    assert prev_y.shape == (n_traj, latent_dim)
    assert selected_state.shape == (n_traj, n_tp - 1, 8)
    assert dt.shape == (n_traj, n_tp - 1)
    assert all(bool(jnp.all(jnp.isfinite(x))) for x in (prev_y, selected_state, dt))
    print("KERNEL_OK")
</pallas_src>

<mosaic_0001>
module attributes {stable_mosaic.version = 11 : i64} {
  func.func @_fused_ode_rnn_kernel(%arg0: i32, %arg1: memref<6xi32, #tpu.memory_space<smem>>, %arg2: memref<6xf32, #tpu.memory_space<smem>>, %arg3: memref<6xf32, #tpu.memory_space<smem>>, %arg4: memref<1x8x16xf32, #tpu.memory_space<vmem>>, %arg5: memref<1x8x1xf32, #tpu.memory_space<vmem>>, %arg6: memref<16x64xf32, #tpu.memory_space<vmem>>, %arg7: memref<8x96xf32, #tpu.memory_space<vmem>>, %arg8: memref<1x64xf32, #tpu.memory_space<vmem>>, %arg9: memref<1x32xf32, #tpu.memory_space<vmem>>, %arg10: memref<64x32xf32, #tpu.memory_space<vmem>>, %arg11: memref<1x32xf32, #tpu.memory_space<vmem>>, %arg12: memref<16x32xf32, #tpu.memory_space<vmem>>, %arg13: memref<32x16xf32, #tpu.memory_space<vmem>>, %arg14: memref<1x16xf32, #tpu.memory_space<vmem>>, %arg15: memref<16x32xf32, #tpu.memory_space<vmem>>, %arg16: memref<1x32xf32, #tpu.memory_space<vmem>>, %arg17: memref<32x16xf32, #tpu.memory_space<vmem>>, %arg18: memref<1x16xf32, #tpu.memory_space<vmem>>, %arg19: memref<16x8xf32, #tpu.memory_space<vmem>>, %arg20: memref<1x8xf32, #tpu.memory_space<vmem>>, %arg21: memref<1x8x8xf32, #tpu.memory_space<vmem>>, %arg22: memref<8x16xf32, #tpu.memory_space<vmem>>, %arg23: memref<8x16xf32, #tpu.memory_space<vmem>>) attributes {dimension_semantics = [#tpu.dimension_semantics<arbitrary>], iteration_bounds = array<i64: 6>, scalar_prefetch = 1 : i64, scratch_operands = 1 : i64, tpu.core_type = #tpu.core_type<tc>, window_params = [{transform_indices = @transform_0, window_bounds = array<i64: 6>}, {transform_indices = @transform_1, window_bounds = array<i64: 6>}, {transform_indices = @transform_2, window_bounds = array<i64: 1, 8, 16>}, {transform_indices = @transform_3, window_bounds = array<i64: 1, 8, 1>}, {pipeline_mode = #tpu.pipeline_mode<synchronous>, transform_indices = @transform_4, window_bounds = array<i64: 16, 64>}, {pipeline_mode = #tpu.pipeline_mode<synchronous>, transform_indices = @transform_5, window_bounds = array<i64: 8, 96>}, {pipeline_mode = #tpu.pipeline_mode<synchronous>, transform_indices = @transform_6, window_bounds = array<i64: 1, 64>}, {pipeline_mode = #tpu.pipeline_mode<synchronous>, transform_indices = @transform_7, window_bounds = array<i64: 1, 32>}, {pipeline_mode = #tpu.pipeline_mode<synchronous>, transform_indices = @transform_8, window_bounds = array<i64: 64, 32>}, {pipeline_mode = #tpu.pipeline_mode<synchronous>, transform_indices = @transform_9, window_bounds = array<i64: 1, 32>}, {pipeline_mode = #tpu.pipeline_mode<synchronous>, transform_indices = @transform_10, window_bounds = array<i64: 16, 32>}, {pipeline_mode = #tpu.pipeline_mode<synchronous>, transform_indices = @transform_11, window_bounds = array<i64: 32, 16>}, {pipeline_mode = #tpu.pipeline_mode<synchronous>, transform_indices = @transform_12, window_bounds = array<i64: 1, 16>}, {pipeline_mode = #tpu.pipeline_mode<synchronous>, transform_indices = @transform_13, window_bounds = array<i64: 16, 32>}, {pipeline_mode = #tpu.pipeline_mode<synchronous>, transform_indices = @transform_14, window_bounds = array<i64: 1, 32>}, {pipeline_mode = #tpu.pipeline_mode<synchronous>, transform_indices = @transform_15, window_bounds = array<i64: 32, 16>}, {pipeline_mode = #tpu.pipeline_mode<synchronous>, transform_indices = @transform_16, window_bounds = array<i64: 1, 16>}, {pipeline_mode = #tpu.pipeline_mode<synchronous>, transform_indices = @transform_17, window_bounds = array<i64: 16, 8>}, {pipeline_mode = #tpu.pipeline_mode<synchronous>, transform_indices = @transform_18, window_bounds = array<i64: 1, 8>}, {transform_indices = @transform_19, window_bounds = array<i64: 1, 8, 8>}, {pipeline_mode = #tpu.pipeline_mode<synchronous>, transform_indices = @transform_20, window_bounds = array<i64: 8, 16>}]} {
    %c0_i32 = arith.constant 0 : i32
    %0 = arith.cmpi eq, %arg0, %c0_i32 : i32
    %1 = arith.extui %0 : i1 to i32
    %c0_i32_0 = arith.constant 0 : i32
    %2 = arith.cmpi ne, %1, %c0_i32_0 : i32
    scf.if %2 {
      %cst_58 = arith.constant 0.000000e+00 : f32
      %97 = vector.broadcast %cst_58 : f32 to vector<8x16xf32>
      %c0_59 = arith.constant 0 : index
      %c0_60 = arith.constant 0 : index
      %98 = vector.load %arg23[%c0_59, %c0_60] : memref<8x16xf32, #tpu.memory_space<vmem>>, vector<8x16xf32>
      tpu.vector_store %arg23[%c0_59, %c0_60], %97 {strides = array<i32>} : memref<8x16xf32, #tpu.memory_space<vmem>>, vector<8x16xf32>,
    } else {
    }
    %c0 = arith.constant 0 : index
    %c0_1 = arith.constant 0 : index
    %3 = vector.load %arg23[%c0, %c0_1] : memref<8x16xf32, #tpu.memory_space<vmem>>, vector<8x16xf32>
    %4 = arith.index_cast %arg0 : i32 to index
    %5 = memref.load %arg1[%4] : memref<6xi32, #tpu.memory_space<smem>>
    %6 = arith.index_cast %arg0 : i32 to index
    %7 = memref.load %arg2[%6] : memref<6xf32, #tpu.memory_space<smem>>
    %c0_2 = arith.constant 0 : index
    %c0_3 = arith.constant 0 : index
    %8 = vector.load %arg15[%c0_2, %c0_3] : memref<16x32xf32, #tpu.memory_space<vmem>>, vector<16x32xf32>
    %c0_4 = arith.constant 0 : index
    %c0_5 = arith.constant 0 : index
    %9 = vector.load %arg16[%c0_4, %c0_5] : memref<1x32xf32, #tpu.memory_space<vmem>>, vector<1x32xf32>
    %c0_6 = arith.constant 0 : index
    %c0_7 = arith.constant 0 : index
    %10 = vector.load %arg17[%c0_6, %c0_7] : memref<32x16xf32, #tpu.memory_space<vmem>>, vector<32x16xf32>
    %c0_8 = arith.constant 0 : index
    %c0_9 = arith.constant 0 : index
    %11 = vector.load %arg18[%c0_8, %c0_9] : memref<1x16xf32, #tpu.memory_space<vmem>>, vector<1x16xf32>
    %cst = arith.constant 0.000000e+00 : f32
    %12 = vector.broadcast %cst : f32 to vector<8x16xf32>
    %c0_i32_10 = arith.constant 0 : i32
    %13 = arith.subi %5, %c0_i32_10 : i32
    %14 = arith.addi %c0_i32_10, %13 : i32
    %c1_i32 = arith.constant 1 : i32
    %15:2 = scf.for %arg24 = %c0_i32_10 to %14 step %c1_i32 iter_args(%arg25 = %3, %arg26 = %12) -> (vector<8x16xf32>, vector<8x16xf32>)  : i32 {
      %97 = arith.addf %arg26, %arg25 : vector<8x16xf32>
      %cst_58 = arith.constant dense<0.000000e+00> : vector<8x32xf32>
      %98 = tpu.matmul %arg25, %8, %cst_58 {dimension_numbers = #tpu.dot_dimension_numbers<[1], [0], [0], [1], [0, 0, 1, 1], [], []>} : vector<8x16xf32>, vector<16x32xf32>, vector<8x32xf32> -> vector<8x32xf32>
      %99 = vector.broadcast %9 : vector<1x32xf32> to vector<8x32xf32>
      %100 = arith.addf %98, %99 : vector<8x32xf32>
      %101 = math.tanh %100 : vector<8x32xf32>
      %cst_59 = arith.constant dense<0.000000e+00> : vector<8x16xf32>
      %102 = tpu.matmul %101, %10, %cst_59 {dimension_numbers = #tpu.dot_dimension_numbers<[1], [0], [0], [1], [0, 0, 1, 1], [], []>} : vector<8x32xf32>, vector<32x16xf32>, vector<8x16xf32> -> vector<8x16xf32>
      %103 = vector.broadcast %11 : vector<1x16xf32> to vector<8x16xf32>
      %104 = arith.addf %102, %103 : vector<8x16xf32>
      %105 = vector.broadcast %7 : f32 to vector<8x16xf32>
      %106 = arith.mulf %105, %104 : vector<8x16xf32>
      %107 = arith.addf %arg25, %106 : vector<8x16xf32>
      scf.yield %107, %97 : vector<8x16xf32>, vector<8x16xf32>
    }
    %16 = arith.index_cast %arg0 : i32 to index
    %17 = memref.load %arg3[%16] : memref<6xf32, #tpu.memory_space<smem>>
    %18 = vector.broadcast %17 : f32 to vector<8x16xf32>
    %19 = arith.mulf %15#1, %18 : vector<8x16xf32>
    %c0_11 = arith.constant 0 : index
    %c0_12 = arith.constant 0 : index
    %20 = vector.load %arg19[%c0_11, %c0_12] : memref<16x8xf32, #tpu.memory_space<vmem>>, vector<16x8xf32>
    %cst_13 = arith.constant dense<0.000000e+00> : vector<8x8xf32>
    %21 = tpu.matmul %19, %20, %cst_13 {dimension_numbers = #tpu.dot_dimension_numbers<[1], [0], [0], [1], [0, 0, 1, 1], [], []>} : vector<8x16xf32>, vector<16x8xf32>, vector<8x8xf32> -> vector<8x8xf32>
    %c0_14 = arith.constant 0 : index
    %c0_15 = arith.constant 0 : index
    %22 = vector.load %arg20[%c0_14, %c0_15] : memref<1x8xf32, #tpu.memory_space<vmem>>, vector<1x8xf32>
    %23 = vector.broadcast %22 : vector<1x8xf32> to vector<8x8xf32>
    %24 = arith.addf %21, %23 : vector<8x8xf32>
    %c0_16 = arith.constant 0 : index
    %c0_17 = arith.constant 0 : index
    %c0_18 = arith.constant 0 : index
    %25 = vector.load %arg21[%c0_16, %c0_17, %c0_18] : memref<1x8x8xf32, #tpu.memory_space<vmem>>, vector<1x8x8xf32>
    %26 = vector.shape_cast %25 : vector<1x8x8xf32> to vector<8x8xf32>
    %27 = vector.shape_cast %24 : vector<8x8xf32> to vector<1x8x8xf32>
    tpu.vector_store %arg21[%c0_16, %c0_17, %c0_18], %27 {strides = array<i32>} : memref<1x8x8xf32, #tpu.memory_space<vmem>>, vector<1x8x8xf32>,
    %c0_19 = arith.constant 0 : index
    %c0_20 = arith.constant 0 : index
    %c0_21 = arith.constant 0 : index
    %28 = vector.load %arg4[%c0_19, %c0_20, %c0_21] : memref<1x8x16xf32, #tpu.memory_space<vmem>>, vector<1x8x16xf32>
    %29 = vector.shape_cast %28 : vector<1x8x16xf32> to vector<8x16xf32>
    %30 = vector.extract_strided_slice %29 {offsets = [0, 0], sizes = [8, 8], strides = [1, 1]} : vector<8x16xf32> to vector<8x8xf32>
    %31 = vector.extract_strided_slice %29 {offsets = [0, 8], sizes = [8, 8], strides = [1, 1]} : vector<8x16xf32> to vector<8x8xf32>
    %c0_22 = arith.constant 0 : index
    %c0_23 = arith.constant 0 : index
    %32 = vector.load %arg7[%c0_22, %c0_23] : memref<8x96xf32, #tpu.memory_space<vmem>>, vector<8x96xf32>
    %cst_24 = arith.constant dense<0.000000e+00> : vector<8x96xf32>
    %33 = tpu.matmul %30, %32, %cst_24 {dimension_numbers = #tpu.dot_dimension_numbers<[1], [0], [0], [1], [0, 0, 1, 1], [], []>} : vector<8x8xf32>, vector<8x96xf32>, vector<8x96xf32> -> vector<8x96xf32>
    %c0_25 = arith.constant 0 : index
    %c0_26 = arith.constant 0 : index
    %34 = vector.load %arg6[%c0_25, %c0_26] : memref<16x64xf32, #tpu.memory_space<vmem>>, vector<16x64xf32>
    %cst_27 = arith.constant dense<0.000000e+00> : vector<8x64xf32>
    %35 = tpu.matmul %15#0, %34, %cst_27 {dimension_numbers = #tpu.dot_dimension_numbers<[1], [0], [0], [1], [0, 0, 1, 1], [], []>} : vector<8x16xf32>, vector<16x64xf32>, vector<8x64xf32> -> vector<8x64xf32>
    %36 = vector.extract_strided_slice %33 {offsets = [0, 0], sizes = [8, 64], strides = [1, 1]} : vector<8x96xf32> to vector<8x64xf32>
    %37 = arith.addf %35, %36 : vector<8x64xf32>
    %c0_28 = arith.constant 0 : index
    %c0_29 = arith.constant 0 : index
    %38 = vector.load %arg8[%c0_28, %c0_29] : memref<1x64xf32, #tpu.memory_space<vmem>>, vector<1x64xf32>
    %39 = vector.broadcast %38 : vector<1x64xf32> to vector<8x64xf32>
    %40 = arith.addf %37, %39 : vector<8x64xf32>
    %41 = math.tanh %40 : vector<8x64xf32>
    %c0_30 = arith.constant 0 : index
    %c0_31 = arith.constant 0 : index
    %42 = vector.load %arg10[%c0_30, %c0_31] : memref<64x32xf32, #tpu.memory_space<vmem>>, vector<64x32xf32>
    %cst_32 = arith.constant dense<0.000000e+00> : vector<8x32xf32>
    %43 = tpu.matmul %41, %42, %cst_32 {dimension_numbers = #tpu.dot_dimension_numbers<[1], [0], [0], [1], [0, 0, 1, 1], [], []>} : vector<8x64xf32>, vector<64x32xf32>, vector<8x32xf32> -> vector<8x32xf32>
    %c0_33 = arith.constant 0 : index
    %c0_34 = arith.constant 0 : index
    %44 = vector.load %arg11[%c0_33, %c0_34] : memref<1x32xf32, #tpu.memory_space<vmem>>, vector<1x32xf32>
    %45 = vector.broadcast %44 : vector<1x32xf32> to vector<8x32xf32>
    %46 = arith.addf %43, %45 : vector<8x32xf32>
    %47 = arith.negf %46 : vector<8x32xf32>
    %48 = math.exp %47 : vector<8x32xf32>
    %cst_35 = arith.constant 1.000000e+00 : f32
    %49 = vector.broadcast %cst_35 : f32 to vector<8x32xf32>
    %50 = arith.addf %49, %48 : vector<8x32xf32>
    %51 = arith.divf %49, %50 : vector<8x32xf32>
    %52 = vector.extract_strided_slice %51 {offsets = [0, 0], sizes = [8, 16], strides = [1, 1]} : vector<8x32xf32> to vector<8x16xf32>
    %53 = vector.extract_strided_slice %51 {offsets = [0, 16], sizes = [8, 16], strides = [1, 1]} : vector<8x32xf32> to vector<8x16xf32>
    %54 = arith.mulf %15#0, %53 : vector<8x16xf32>
    %c0_36 = arith.constant 0 : index
    %c0_37 = arith.constant 0 : index
    %55 = vector.load %arg12[%c0_36, %c0_37] : memref<16x32xf32, #tpu.memory_space<vmem>>, vector<16x32xf32>
    %cst_38 = arith.constant dense<0.000000e+00> : vector<8x32xf32>
    %56 = tpu.matmul %54, %55, %cst_38 {dimension_numbers = #tpu.dot_dimension_numbers<[1], [0], [0], [1], [0, 0, 1, 1], [], []>} : vector<8x16xf32>, vector<16x32xf32>, vector<8x32xf32> -> vector<8x32xf32>
    %57 = vector.extract_strided_slice %33 {offsets = [0, 64], sizes = [8, 32], strides = [1, 1]} : vector<8x96xf32> to vector<8x32xf32>
    %58 = arith.addf %56, %57 : vector<8x32xf32>
    %c0_39 = arith.constant 0 : index
    %c0_40 = arith.constant 0 : index
    %59 = vector.load %arg9[%c0_39, %c0_40] : memref<1x32xf32, #tpu.memory_space<vmem>>, vector<1x32xf32>
    %60 = vector.broadcast %59 : vector<1x32xf32> to vector<8x32xf32>
    %61 = arith.addf %58, %60 : vector<8x32xf32>
    %62 = math.tanh %61 : vector<8x32xf32>
    %c0_41 = arith.constant 0 : index
    %c0_42 = arith.constant 0 : index
    %63 = vector.load %arg13[%c0_41, %c0_42] : memref<32x16xf32, #tpu.memory_space<vmem>>, vector<32x16xf32>
    %cst_43 = arith.constant dense<0.000000e+00> : vector<8x16xf32>
    %64 = tpu.matmul %62, %63, %cst_43 {dimension_numbers = #tpu.dot_dimension_numbers<[1], [0], [0], [1], [0, 0, 1, 1], [], []>} : vector<8x32xf32>, vector<32x16xf32>, vector<8x16xf32> -> vector<8x16xf32>
    %c0_44 = arith.constant 0 : index
    %c0_45 = arith.constant 0 : index
    %65 = vector.load %arg14[%c0_44, %c0_45] : memref<1x16xf32, #tpu.memory_space<vmem>>, vector<1x16xf32>
    %66 = vector.broadcast %65 : vector<1x16xf32> to vector<8x16xf32>
    %67 = arith.addf %64, %66 : vector<8x16xf32>
    %cst_46 = arith.constant 1.000000e+00 : f32
    %68 = vector.broadcast %cst_46 : f32 to vector<8x16xf32>
    %69 = arith.subf %68, %52 : vector<8x16xf32>
    %70 = arith.mulf %69, %67 : vector<8x16xf32>
    %71 = arith.mulf %52, %15#0 : vector<8x16xf32>
    %72 = arith.addf %70, %71 : vector<8x16xf32>
    %cst_47 = arith.constant dense<0.000000e+00> : vector<8xf32>
    %73 = vector.multi_reduction <add>, %31, %cst_47 [1] : vector<8x8xf32> to vector<8xf32>
    %74 = vector.shape_cast %73 : vector<8xf32> to vector<8x1xf32>
    %cst_48 = arith.constant 0.000000e+00 : f32
    %75 = vector.broadcast %cst_48 : f32 to vector<8x1xf32>
    %76 = arith.cmpf ogt, %74, %75 : vector<8x1xf32>
    %77 = arith.extui %76 : vector<8x1xi1> to vector<8x1xi32>
    %78 = arith.sitofp %77 : vector<8x1xi32> to vector<8x1xf32>
    %79 = vector.broadcast %78 : vector<8x1xf32> to vector<8x16xf32>
    %80 = arith.mulf %79, %72 : vector<8x16xf32>
    %cst_49 = arith.constant 1.000000e+00 : f32
    %81 = vector.broadcast %cst_49 : f32 to vector<8x1xf32>
    %82 = arith.subf %81, %78 : vector<8x1xf32>
    %83 = vector.broadcast %82 : vector<8x1xf32> to vector<8x16xf32>
    %84 = arith.mulf %83, %15#0 : vector<8x16xf32>
    %85 = arith.addf %80, %84 : vector<8x16xf32>
    %c0_50 = arith.constant 0 : index
    %c0_51 = arith.constant 0 : index
    %c0_52 = arith.constant 0 : index
    %86 = vector.load %arg5[%c0_50, %c0_51, %c0_52] : memref<1x8x1xf32, #tpu.memory_space<vmem>>, vector<1x8x1xf32>
    %87 = vector.shape_cast %86 : vector<1x8x1xf32> to vector<8x1xf32>
    %88 = vector.broadcast %87 : vector<8x1xf32> to vector<8x16xf32>
    %89 = arith.mulf %85, %88 : vector<8x16xf32>
    %cst_53 = arith.constant 1.000000e+00 : f32
    %90 = vector.broadcast %cst_53 : f32 to vector<8x1xf32>
    %91 = arith.subf %90, %87 : vector<8x1xf32>
    %92 = vector.broadcast %91 : vector<8x1xf32> to vector<8x16xf32>
    %93 = arith.mulf %15#0, %92 : vector<8x16xf32>
    %94 = arith.addf %89, %93 : vector<8x16xf32>
    %c0_54 = arith.constant 0 : index
    %c0_55 = arith.constant 0 : index
    %95 = vector.load %arg23[%c0_54, %c0_55] : memref<8x16xf32, #tpu.memory_space<vmem>>, vector<8x16xf32>
    tpu.vector_store %arg23[%c0_54, %c0_55], %94 {strides = array<i32>} : memref<8x16xf32, #tpu.memory_space<vmem>>, vector<8x16xf32>,
    %c0_56 = arith.constant 0 : index
    %c0_57 = arith.constant 0 : index
    %96 = vector.load %arg22[%c0_56, %c0_57] : memref<8x16xf32, #tpu.memory_space<vmem>>, vector<8x16xf32>
    tpu.vector_store %arg22[%c0_56, %c0_57], %94 {strides = array<i32>} : memref<8x16xf32, #tpu.memory_space<vmem>>, vector<8x16xf32>,
    return
  }
  func.func @transform_0(%arg0: i32, %arg1: memref<6xi32, #tpu.memory_space<smem>>) -> i32 {
    %c0_i32 = arith.constant 0 : i32
    %c0_i32_0 = arith.constant 0 : i32
    return %c0_i32 : i32
  }
  func.func @transform_1(%arg0: i32, %arg1: memref<6xi32, #tpu.memory_space<smem>>) -> i32 {
    %c0_i32 = arith.constant 0 : i32
    %c0_i32_0 = arith.constant 0 : i32
    return %c0_i32 : i32
  }
  func.func @transform_2(%arg0: i32, %arg1: memref<6xi32, #tpu.memory_space<smem>>) -> (i32, i32, i32) {
    %c0_i32 = arith.constant 0 : i32
    %c0_i32_0 = arith.constant 0 : i32
    %c0_i32_1 = arith.constant 0 : i32
    return %arg0, %c0_i32, %c0_i32_0 : i32, i32, i32
  }
  func.func @transform_3(%arg0: i32, %arg1: memref<6xi32, #tpu.memory_space<smem>>) -> (i32, i32, i32) {
    %c0_i32 = arith.constant 0 : i32
    %c0_i32_0 = arith.constant 0 : i32
    %c0_i32_1 = arith.constant 0 : i32
    return %arg0, %c0_i32, %c0_i32_0 : i32, i32, i32
  }
  func.func @transform_4(%arg0: i32, %arg1: memref<6xi32, #tpu.memory_space<smem>>) -> (i32, i32) {
    %c0_i32 = arith.constant 0 : i32
    %c0_i32_0 = arith.constant 0 : i32
    %c0_i32_1 = arith.constant 0 : i32
    return %c0_i32, %c0_i32_0 : i32, i32
  }
  func.func @transform_5(%arg0: i32, %arg1: memref<6xi32, #tpu.memory_space<smem>>) -> (i32, i32) {
    %c0_i32 = arith.constant 0 : i32
    %c0_i32_0 = arith.constant 0 : i32
    %c0_i32_1 = arith.constant 0 : i32
    return %c0_i32, %c0_i32_0 : i32, i32
  }
  func.func @transform_6(%arg0: i32, %arg1: memref<6xi32, #tpu.memory_space<smem>>) -> (i32, i32) {
    %c0_i32 = arith.constant 0 : i32
    %c0_i32_0 = arith.constant 0 : i32
    %c0_i32_1 = arith.constant 0 : i32
    return %c0_i32, %c0_i32_0 : i32, i32
  }
  func.func @transform_7(%arg0: i32, %arg1: memref<6xi32, #tpu.memory_space<smem>>) -> (i32, i32) {
    %c0_i32 = arith.constant 0 : i32
    %c0_i32_0 = arith.constant 0 : i32
    %c0_i32_1 = arith.constant 0 : i32
    return %c0_i32, %c0_i32_0 : i32, i32
  }
  func.func @transform_8(%arg0: i32, %arg1: memref<6xi32, #tpu.memory_space<smem>>) -> (i32, i32) {
    %c0_i32 = arith.constant 0 : i32
    %c0_i32_0 = arith.constant 0 : i32
    %c0_i32_1 = arith.constant 0 : i32
    return %c0_i32, %c0_i32_0 : i32, i32
  }
  func.func @transform_9(%arg0: i32, %arg1: memref<6xi32, #tpu.memory_space<smem>>) -> (i32, i32) {
    %c0_i32 = arith.constant 0 : i32
    %c0_i32_0 = arith.constant 0 : i32
    %c0_i32_1 = arith.constant 0 : i32
    return %c0_i32, %c0_i32_0 : i32, i32
  }
  func.func @transform_10(%arg0: i32, %arg1: memref<6xi32, #tpu.memory_space<smem>>) -> (i32, i32) {
    %c0_i32 = arith.constant 0 : i32
    %c0_i32_0 = arith.constant 0 : i32
    %c0_i32_1 = arith.constant 0 : i32
    return %c0_i32, %c0_i32_0 : i32, i32
  }
  func.func @transform_11(%arg0: i32, %arg1: memref<6xi32, #tpu.memory_space<smem>>) -> (i32, i32) {
    %c0_i32 = arith.constant 0 : i32
    %c0_i32_0 = arith.constant 0 : i32
    %c0_i32_1 = arith.constant 0 : i32
    return %c0_i32, %c0_i32_0 : i32, i32
  }
  func.func @transform_12(%arg0: i32, %arg1: memref<6xi32, #tpu.memory_space<smem>>) -> (i32, i32) {
    %c0_i32 = arith.constant 0 : i32
    %c0_i32_0 = arith.constant 0 : i32
    %c0_i32_1 = arith.constant 0 : i32
    return %c0_i32, %c0_i32_0 : i32, i32
  }
  func.func @transform_13(%arg0: i32, %arg1: memref<6xi32, #tpu.memory_space<smem>>) -> (i32, i32) {
    %c0_i32 = arith.constant 0 : i32
    %c0_i32_0 = arith.constant 0 : i32
    %c0_i32_1 = arith.constant 0 : i32
    return %c0_i32, %c0_i32_0 : i32, i32
  }
  func.func @transform_14(%arg0: i32, %arg1: memref<6xi32, #tpu.memory_space<smem>>) -> (i32, i32) {
    %c0_i32 = arith.constant 0 : i32
    %c0_i32_0 = arith.constant 0 : i32
    %c0_i32_1 = arith.constant 0 : i32
    return %c0_i32, %c0_i32_0 : i32, i32
  }
  func.func @transform_15(%arg0: i32, %arg1: memref<6xi32, #tpu.memory_space<smem>>) -> (i32, i32) {
    %c0_i32 = arith.constant 0 : i32
    %c0_i32_0 = arith.constant 0 : i32
    %c0_i32_1 = arith.constant 0 : i32
    return %c0_i32, %c0_i32_0 : i32, i32
  }
  func.func @transform_16(%arg0: i32, %arg1: memref<6xi32, #tpu.memory_space<smem>>) -> (i32, i32) {
    %c0_i32 = arith.constant 0 : i32
    %c0_i32_0 = arith.constant 0 : i32
    %c0_i32_1 = arith.constant 0 : i32
    return %c0_i32, %c0_i32_0 : i32, i32
  }
  func.func @transform_17(%arg0: i32, %arg1: memref<6xi32, #tpu.memory_space<smem>>) -> (i32, i32) {
    %c0_i32 = arith.constant 0 : i32
    %c0_i32_0 = arith.constant 0 : i32
    %c0_i32_1 = arith.constant 0 : i32
    return %c0_i32, %c0_i32_0 : i32, i32
  }
  func.func @transform_18(%arg0: i32, %arg1: memref<6xi32, #tpu.memory_space<smem>>) -> (i32, i32) {
    %c0_i32 = arith.constant 0 : i32
    %c0_i32_0 = arith.constant 0 : i32
    %c0_i32_1 = arith.constant 0 : i32
    return %c0_i32, %c0_i32_0 : i32, i32
  }
  func.func @transform_19(%arg0: i32, %arg1: memref<6xi32, #tpu.memory_space<smem>>) -> (i32, i32, i32) {
    %c0_i32 = arith.constant 0 : i32
    %c0_i32_0 = arith.constant 0 : i32
    %c0_i32_1 = arith.constant 0 : i32
    return %arg0, %c0_i32, %c0_i32_0 : i32, i32, i32
  }
  func.func @transform_20(%arg0: i32, %arg1: memref<6xi32, #tpu.memory_space<smem>>) -> (i32, i32) {
    %c0_i32 = arith.constant 0 : i32
    %c0_i32_0 = arith.constant 0 : i32
    %c0_i32_1 = arith.constant 0 : i32
    return %c0_i32, %c0_i32_0 : i32, i32
  }
}

</mosaic_0001>

<bundles_post_ra>
// kernel: tpu_custom_call.1
= control target key start
LH: loop header
LB: loop body
LE: loop exit
PB: predicated region body
PF: predicated region fallthrough
CT: control target
= control target key end

     0   :  { %s1505_s27 = smov [#allocation4]   ;;  %s1898_s0 = inlined_call_operand.vmem [shape: s32[6], index: 0, kind: input, shape index: {}]   ;;  %s1899_s1 = inlined_call_operand.vmem [shape: f32[6], index: 1, kind: input, shape index: {}]   ;;  %s1900_s2 = inlined_call_operand.vmem [shape: f32[6], index: 2, kind: input, shape index: {}]   ;;  %s1901_s3 = inlined_call_operand.vmem [shape: f32[6,8,16], index: 3, kind: input, shape index: {}]   ;;  %s1902_s4 = inlined_call_operand.vmem [shape: f32[6,8,1], index: 4, kind: input, shape index: {}]   ;;  %s1903_s5 = inlined_call_operand.vmem [shape: f32[16,64], index: 5, kind: input, shape index: {}]   ;;  %s1904_s6 = inlined_call_operand.vmem [shape: f32[8,96], index: 6, kind: input, shape index: {}]   ;;  %s1905_s7 = inlined_call_operand.vmem [shape: f32[1,64], index: 7, kind: input, shape index: {}]   ;;  %s1906_s8 = inlined_call_operand.vmem [shape: f32[1,32], index: 8, kind: input, shape index: {}]   ;;  %s1907_s9 = inlined_call_operand.vmem [shape: f32[64,32], index: 9, kind: input, shape index: {}]   ;;  %s1908_s10 = inlined_call_operand.vmem [shape: f32[1,32], index: 10, kind: input, shape index: {}]   ;;  %s1909_s11 = inlined_call_operand.vmem [shape: f32[16,32], index: 11, kind: input, shape index: {}]   ;;  %s1910_s12 = inlined_call_operand.vmem [shape: f32[32,16], index: 12, kind: input, shape index: {}]   ;;  %s1911_s13 = inlined_call_operand.vmem [shape: f32[1,16], index: 13, kind: input, shape index: {}]   ;;  %s1912_s14 = inlined_call_operand.vmem [shape: f32[16,32], index: 14, kind: input, shape index: {}]   ;;  %s1913_s15 = inlined_call_operand.vmem [shape: f32[1,32], index: 15, kind: input, shape index: {}]   ;;  %s1914_s16 = inlined_call_operand.vmem [shape: f32[32,16], index: 16, kind: input, shape index: {}]   ;;  %s1915_s17 = inlined_call_operand.vmem [shape: f32[1,16], index: 17, kind: input, shape index: {}]   ;;  %s1916_s18 = inlined_call_operand.vmem [shape: f32[16,8], index: 18, kind: input, shape index: {}]   ;;  %s1917_s19 = inlined_call_operand.vmem [shape: f32[1,8], index: 19, kind: input, shape index: {}]   ;;  %s1918_s20 = inlined_call_operand.hbm [shape: f32[6,8,8], index: 20, kind: output, shape index: {0}]   ;;  %s1919_s21 = inlined_call_operand.hbm [shape: f32[8,16], index: 21, kind: output, shape index: {1}]  }
   0x1   :  { %1929 = sst [smem:[#allocation24_spill]] %s1898_s0 }
   0x2   :  { %1930 = sst [smem:[#allocation25_spill]] %s1899_s1 }
   0x3   :  { %1931 = sst [smem:[#allocation26_spill]] %s1900_s2 }
   0x4   :  { %1932 = sst [smem:[#allocation27_spill]] %s1901_s3 }
   0x5   :  { %1933 = sst [smem:[#allocation28_spill]] %s1902_s4 }
   0x6   :  { %1934 = sst [smem:[#allocation29_spill]] %s1903_s5 }
   0x7   :  { %1935 = sst [smem:[#allocation30_spill]] %s1911_s13 }
   0x8   :  { %1936 = sst [smem:[#allocation31_spill]] %s1912_s14 }
   0x9   :  { %1937 = sst [smem:[#allocation32_spill]] %s1917_s19 }
   0xa   :  { %1938 = sst [smem:[#allocation33_spill]] %s1918_s20 }
   0xb   :  { %1939 = sst [smem:[#allocation34_spill]] %s1919_s21 }
   0xc   :  { %s1940_s26 = sld [smem:[#allocation24_spill]] }
  0x12   :  { %s28_s13 = sshll.u32 %s1940_s26, 4  ;;  %s29_s13 = int_to_ptr.vmem [resolvable:$true] %s28_s13 }
  0x13   :  { %31 = dma.vmem_to_smem %s29_s13, 16, %s1505_s27, [#allocation3] }
  0x14   :  { %1451 = dma.done.wait [#allocation3], 16 }
  0x15   :  { %1452 = vsyncadd [#allocation3], 4294967280 }
  0x16   :  { %34 = sfence }
  0x17   :  { %35 = vsyncpa [#allocation7], 0 }
  0x18   :  { %36 = vsyncpa [#allocation9], 0 }
  0x19   :  { %37 = vsyncpa [#allocation6], 0 }
  0x1a   :  { %39 = vsyncpa [#allocation6 + $0x1], 0 }
  0x1b   :  { %40 = vsyncpa [#allocation12], 0  ;;  %s1628_s3 = smov 0   ;;  %s1630_s28 = smov 0  }
  0x1c   :  { %s1632_s29 = smov 0   ;;  %s1634_s0 = smov 0  }
  0x1d LB: > { %1941 = sst [smem:[#allocation18_spill]] %s1471_s3  ;;  %s1649_s13 = sadd.s32 4294967295, %s1483_s0   ;;  %s1483_s0 = sphi %s1634_s0, %s1965_s0   ;;  %s1479_s29 = sphi %s1632_s29, %s1967_s29   ;;  %s1475_s28 = sphi %s1630_s28, %s1969_s28   ;;  %s1471_s3 = sphi %s1628_s3, %s1968_s3  }
  0x1e   : > { %1942 = sst [smem:[#allocation19_spill]] %s1479_s29  ;;  %s1157_s4 = sadd.s32 4294967294, %s1483_s0  }
  0x1f   : > { %1943 = sst [smem:[#allocation20_spill]] %s1483_s0  ;;  %s1653_s30 = sadd.s32 1, %s1483_s0  }
  0x20   : > { %1944 = sst [smem:[#allocation21_spill]] %s1653_s30  ;;  %s462_s5 = sadd.s32 1, %s1479_s29 }
  0x21   : > { %s459_s22 = ssub.s32 %s1483_s0, %s1653_s30  ;;  %p472_p0 = scmp.ne.s32.totalorder %s1479_s29, %s1475_s28 }
  0x22   : > { %p460_p1 = scmp.eq.s32.totalorder %s459_s22, 0  ;;  %p473_p2 = scmp.eq.s32.totalorder %s1649_s13, 5 }
  0x23   : > { %p478_p3 = scmp.ne.s32.totalorder %s1475_s28, %s1471_s3  ;;  %p479_p4 = scmp.eq.s32.totalorder %s1157_s4, 5 }
  0x24   : > { %s1664_s23 = scalar_select %p460_p1, %s1479_s29, %s462_s5  }
  0x25   : > { %p1668_p5 = por %p473_p2, %p472_p0  ;;  %p1672_p6 = por %p479_p4, %p478_p3 }
  0x26   : > { %1945 = sst [smem:[#allocation22_spill]] %s1664_s23  ;;  %p1158_p7 = scmp.ge.s32.totalorder %s1483_s0, 1 }
  0x27   : > { %s1947_s24 = scalar_select %p1672_p6, 1, 0 }
  0x28   : > { %p507_p8 = scmp.lt.s32.totalorder %s1483_s0, 7  ;;  %p1159_p9 = scmp.ne.s32.totalorder %s1649_s13, 0 }
  0x29   : > { %1948 = sst [smem:[#allocation23_spill]] %s1947_s24  ;;  %p1211_p10 = scmp.eq.s32.totalorder %s1649_s13, 0 }
  0x2a   : > { %p508_p11 = pnand %p1158_p7, %p507_p8  ;;  %s1949_s26 = sld [smem:[#allocation25_spill]] }
  0x2b   : > { %s1950_s22 = sld [smem:[#allocation26_spill]]  ;;  %s1506_s29 = smov [#allocation5]  }
  0x2c   : > { %p1200_p12 = pneg %p508_p11  ;;  %s1507_s30 = smov [#allocation8]  }
  0x2e   : > { %p1201_p13 = pnand %p1211_p10, %p1200_p12 }
  0x2f   : > { %601 = sbr.rel (%p508_p11) target bundleno = 1068 (0x42c), region = 96 }
  0x30   : > { %s519_s27 = sshll.u32 %s1949_s26, 4  ;;  %s520_s27 = int_to_ptr.vmem [resolvable:$true] %s519_s27 }
  0x31   : > { %s529_s23 = sshll.u32 %s1950_s22, 4  ;;  %s530_s23 = int_to_ptr.vmem [resolvable:$true] %s529_s23 }
  0x32   : > { %1203 = dma.vmem_to_smem (!%p1201_p13), %s520_s27, 16, %s1506_s29, [#allocation7]  }
  0x33   : > { %1206 = dma.vmem_to_smem (!%p1201_p13), %s530_s23, 16, %s1507_s30, [#allocation9]  }
  0x34   : > { %1454 = dma.done.wait (%p1211_p10), [#allocation7], 16  }
  0x35   : > { %1456 = vsyncadd (%p1211_p10), [#allocation7], 4294967280 }
  0x36   : > { %1458 = dma.done.wait (%p1211_p10), [#allocation9], 16  }
  0x37   : > { %1460 = vsyncadd (%p1211_p10), [#allocation9], 4294967280 }
  0x38   : > { %613 = sfence }
  0x39   : > { %s1927_s29 = sand.u32 1, %s1475_s28   ;;  %p669_p0 = scmp.lt.s32.totalorder %s1649_s13, 5 }
  0x3a   : > { %s1700_s30 = sshll.u32 %s1927_s29, 3  ;;  %s1951_s27 = sld [smem:[#allocation27_spill]] }
  0x3b   : > { %s670_s23 = scalar_select %p669_p0, %s1649_s13, 5 }
  0x3c   : > { %s1952_s24 = sld [smem:[#allocation28_spill]] }
  0x3d   : > { %s1166_s2 = sshll.u32 %s670_s23, 3 }
  0x3e   : > { %680 = sbr.rel (%p1159_p9) target bundleno = 69 (0x45), region = 108 }
  0x40   : > { %s1706_s4 = scalar_lea.vmem %s1951_s27, %s1166_s2 }
  0x42   : > { %s1711_s3 = scalar_lea.vmem %s1952_s24, %s1166_s2 }
  0x43   : > { %vm681_vm0 = vcmask 130048   ;;  %v1508_v0 = vmov 0.0  }
  0x44   : > { %682 = vst.msk [vmem:[#allocation2] sm:$0xff] %vm681_vm0, %v1508_v0 }
  0x45 PF: > { %s1717_s23 = sld [smem:[#allocation4 + %s1649_s13]]  ;;  %v688_v4 = vld [vmem:[%s1913_s15] sm:$0x1]  ;;  %v690_v6 = vld [vmem:[%s1914_s16 + $0x8] sm:$0xff]  ;;  %v691_v7 = vld [vmem:[%s1914_s16 + $0x10] sm:$0xff]  ;;  %v1497_v10 = vmov 0.0  }
  0x46   : > { %s1953_s14 = sld [smem:[#allocation31_spill]]  ;;  %v689_v5 = vld [vmem:[%s1914_s16] sm:$0xff]  ;;  %v692_v8 = vld [vmem:[%s1914_s16 + $0x18] sm:$0xff] }
  0x47   : > { %s1726_s2 = sld [smem:[#allocation5 + %s1649_s13]]  ;;  %v693_v9 = vld [vmem:[%s1915_s17] sm:$0x1] }
  0x4b   : > { %v683_v1 = vld [vmem:[#allocation2] sm:$0xff]   ;;  %p1169_p1 = scmp.le.s32.totalorder %s1717_s23, 0 }
  0x4c   : > { %v686_v2 = vld [vmem:[%s1953_s14] sm:$0xff]  ;;  %v687_v3 = vld [vmem:[%s1953_s14 + $0x8] sm:$0xff]  ;;  %v1501_v11 = vmov %v683_v1   ;;  %s1747_s19 = smov (!%p1169_p1), 0  }
  0x4d   : > { %1099 = sbr.rel (%p1169_p1) target bundleno = 354 (0x162), region = 156 }
  0x52   : > { %v1485_v12 = vmov 0.0   ;;  %v1489_v13 = vmov %v683_v1  }
  0x53 LB: >> { %724 = vmatpush.msra.mxu0 %v687_v3  ;;  %vm706_vm1 = vcmask 130048   ;;  %750 = vmatpush.msra.mxu1 %v692_v8  ;;  %v702_v14 = vadd.f32 %v1487_v12, %v1491_v13   ;;  %v704_v15 = vperm.slane %v688_v4, 0  ;;  %vm734_vm2 = vcmask 261120   ;;  %s697_s19 = sadd.s32 1, %s1495_s19   ;;  %s1495_s19 = sphi %s1747_s19, %s697_s19   ;;  %v1491_v13 = vphi %v1489_v13, %v1490_v13   ;;  %v1487_v12 = vphi %v1485_v12, %v1486_v12  }
  0x54   : >> { %v732_v19 = vperm.slane %v693_v9, 0  ;;  %v758_v21 = vstv %s1726_s2  ;;  %p696_p3 = scmp.ge.s32.totalorder %s697_s19, %s1717_s23 }
  0x55   : >> { %725 = vmatpush.msra.mxu0 %v686_v2  ;;  %751 = vmatpush.msra.mxu1 %v691_v7  ;;  %v1486_v12 = vmov %v702_v14   ;;  %v1498_v10 = vmov (%p696_p3), %v702_v14  }
  0x56   : >> { %1170 = vmatmul.msk.f32.vlgmr.msra.gmra.mxu0 %vm706_vm1, %v1491_v13 }
  0x57   : >> { %752 = vmatpush.msra.mxu1 %v690_v6 }
  0x59   : >> { %753 = vmatpush.msra.mxu1 %v689_v5 }
  0xd3   : >> { %v727_v16 = vpop.f32.mrf.mxu0 }
  0xd4   : >> { %v728_v17 = vadd.f32 %v727_v16, %v704_v15 }
  0xd6   : >> { %1300 = vtanh.f32 %v728_v17 }
  0xdc   : >> { %v1301_v18 = vpop.eup %1300 }
  0xdd   : >> { %1171 = vmatmul.msk.f32.vlgmr.msra.gmra.mxu1 %vm734_vm2, %v1301_v18 }
 0x15a   : >> { %v755_v20 = vpop.f32.mrf.mxu1 }
 0x15b   : >> { %v756_v22 = vadd.f32 %v755_v20, %v732_v19 }
 0x15d   : >> { %v759_v23 = vmul.f32 %v758_v21, %v756_v22  ;;  %699 = sbr.rel (!%p696_p3) target bundleno = 83 (0x53), region = 162 }
 0x15f   : >> { %v760_v24 = vadd.f32 %v1491_v13, %v759_v23  }
 0x161   : >> { %v1490_v13 = vmov %v760_v24   ;;  %v1502_v11 = vmov (%p696_p3), %v760_v24  }
 0x162 PF: > { %s1954_s21 = sld [smem:[#allocation29_spill]]  ;;  %v797_v27 = vld [vmem:[%s1904_s6] sm:$0xff]  ;;  %vm794_vm3 = vcmask 64512   ;;  %vm770_vm4 = vcmask 130048   ;;  %v859_v29 = vld [vmem:[%s1907_s9 + $0x38] sm:$0xff]  ;;  %v858_v30 = vld [vmem:[%s1907_s9 + $0x30] sm:$0xff]  ;;  %v1503_v11 = vphi %v1501_v11, %v1502_v11   ;;  %v1499_v10 = vphi %v1497_v10, %v1498_v10  }
 0x163   : > { %816 = vmatpush.msra.mxu1 %v797_v27  ;;  %v796_v28 = vld [vmem:[%s1706_s4] sm:$0xff]  ;;  %876 = vmatpush.msra.mxu3 %v859_v29  ;;  %v857_v31 = vld [vmem:[%s1907_s9 + $0x28] sm:$0xff]  ;;  %v855_v33 = vld [vmem:[%s1907_s9 + $0x18] sm:$0xff]  ;;  %vm864_vm5 = vcmask 523264   ;;  %s1509_s0 = smov 120   ;;  %s1510_s29 = smov 112  }
 0x164   : > { %1173 = vmatmul.msk.f32.vlgmr.msra.gmra.mxu1 %vm794_vm3, %v796_v28  ;;  %v856_v32 = vld [vmem:[%s1907_s9 + $0x20] sm:$0xff]  ;;  %v854_v34 = vld [vmem:[%s1907_s9 + $0x10] sm:$0xff]  ;;  %v853_v35 = vld [vmem:[%s1907_s9 + $0x8] sm:$0xff]  ;;  %983 = vrot.lane.b32.xlu1 %v796_v28, %s1509_s0  ;;  %s1511_s5 = smov 64   ;;  %s761_s22 = sld [smem:[#allocation8 + %s1649_s13]]  ;;  %vm955_vm10 = vcmask 261120  }
 0x165   : > { %877 = vmatpush.msra.mxu3 %v858_v30  ;;  %v852_v36 = vld [vmem:[%s1907_s9] sm:$0xff]  ;;  %v913_v47 = vld [vmem:[%s1909_s11 + $0x8] sm:$0xff]  ;;  %v950_v3 = vld [vmem:[%s1910_s12 + $0x18] sm:$0xff]  ;;  %s1955_s25 = sld [smem:[#allocation33_spill]]  ;;  %s1957_s19 = scalar_lea.vmem [#allocation10], %s1700_s30 }
 0x166   : > { %v1304_v38 = vld [vmem:[%s1905_s7] ss:$0 sm:$0xff]  ;;  %935 = vmatpush.msrb.mxu1 %v913_v47  ;;  %v765_v63 = vld [vmem:[%s1916_s18 + $0x8] sm:$0xff]  ;;  %v949_v4 = vld [vmem:[%s1910_s12 + $0x10] sm:$0xff]  ;;  %s1956_s4 = sld [smem:[#allocation32_spill]]  ;;  %s1026_s14 = sshll.u32 %s1957_s19, 4  ;;  %s1027_s14 = int_to_ptr.vmem [resolvable:$true] %s1026_s14 }
 0x167   : > { %878 = vmatpush.msra.mxu3 %v857_v31  ;;  %v1305_v43 = vld [vmem:[%s1908_s10] ss:$0 sm:$0xff]  ;;  %788 = vmatpush.msra.mxu0 %v765_v63  ;;  %v948_v5 = vld [vmem:[%s1910_s12 + $0x8] sm:$0xff]  ;;  %s1958_s0 = smov %s1957_s19 }
 0x168   : > { %v822_v25 = vld [vmem:[%s1954_s21 + $0x8] sm:$0xff]  ;;  %v821_v26 = vld [vmem:[%s1954_s21] sm:$0xff] }
 0x169   : > { %840 = vmatpush.msra.mxu2 %v822_v25  ;;  %879 = vmatpush.msra.mxu3 %v856_v32  ;;  %v912_v48 = vld [vmem:[%s1909_s11] sm:$0xff] }
 0x16a   : > { %936 = vmatpush.msrb.mxu1 %v912_v48  ;;  %v762_v0 = vstv %s761_s22  ;;  %v764_v1 = vld [vmem:[%s1916_s18] sm:$0xff] }
 0x16b   : > { %841 = vmatpush.msra.mxu2 %v821_v26  ;;  %880 = vmatpush.msra.mxu3 %v855_v33  ;;  %v763_v2 = vmul.f32 %v1499_v10, %v762_v0  ;;  %v947_v6 = vld [vmem:[%s1910_s12] sm:$0xff]  ;;  %v1512_v10 = vmov 0  }
 0x16c   : > { %1174 = vmatmul.msk.f32.vlgmr.msra.gmra.mxu2 %vm770_vm4, %v1503_v11  ;;  %789 = vmatpush.msra.mxu0 %v764_v1  ;;  %v996_v8 = vld [vmem:[%s1711_s3] sm:$0xff]  ;;  %s1181_s3 = sshll.u32 %s1649_s13, 3 }
 0x16d   : > { %881 = vmatpush.msra.mxu3 %v854_v34  ;;  %1172 = vmatmul.msk.f32.vlgmr.msra.gmra.mxu0 %vm770_vm4, %v763_v2  ;;  %v1003_v12 = vsub.f32 1.0, %v996_v8  ;;  %v1306_v13 = vld [vmem:[%s1906_s8] ss:$0 sm:$0xff]  ;;  %s1024_s26 = scalar_lea.hbm %s1955_s25, %s1181_s3 }
 0x16e   : > { %971 = vmatpush.msrb.mxu0 %v950_v3  ;;  %1302 = vset.pattern.permute.xlu2 %v1512_v10  ;;  %v1307_v19 = vld [vmem:[%s1956_s4] ss:$0 sm:$0xff]  ;;  %s1028_s20 = sshll.u32 %s1024_s26, 4  ;;  %s1379_s26 = scalar_lea.hbm %s1955_s25, 48  ;;  %s1029_s20 = int_to_ptr.hbm [resolvable:$true] %s1028_s20 }
 0x16f   : > { %882 = vmatpush.msra.mxu3 %v853_v35  ;;  %1303 = vset.pattern.permute.xlu0 %v1512_v10  ;;  %s1373_s22 = sshra.s32 %s1029_s20, 4  ;;  %s1374_s22 = int_to_ptr.hbm [resolvable:$true] %s1373_s22 }
 0x170   : > { %972 = vmatpush.msrb.mxu0 %v949_v4  ;;  %999 = vperm.xlu2 %1302, %v996_v8   ;;  %s1375_s23 = scalar_lea.hbm %s1374_s22, 8  ;;  %p1380_p9 = scmp.lt.s32.totalorder %s1374_s22, %s1955_s25 }
 0x171   : > { %883 = vmatpush.msra.mxu3 %v852_v36  ;;  %p1376_p4 = scmp.ne.s32.totalorder %s1374_s22, %s1375_s23  ;;  %p1381_p10 = scmp.lt.s32.totalorder %s1379_s26, %s1375_s23 }
 0x172   : > { %973 = vmatpush.msrb.mxu0 %v948_v5 }
 0x173   : > { %p1377_p7 = pnand %p1376_p4, %p1668_p5  ;;  %p1382_p11 = por %p1381_p10, %p1380_p9 }
 0x174   : > { %974 = vmatpush.msrb.mxu0 %v947_v6 }
 0x175   : > { %p1378_p8 = pneg %p1377_p7 }
 0x177   : > { %p1383_p12 = pnand %p1382_p11, %p1378_p8 }
 0x178   : > { %1006 = vperm.xlu2 %1302, %v1003_v12  }
 0x1d6   : > { %v984_v7 = vpop.permute.xlu1 %983 }
 0x1d7   : > { %v986_v9 = vsel %vm794_vm3, %v984_v7, 0.0 }
 0x1d8   : > { %987 = vadd.xlane.f32.xlu1 %v986_v9 }
 0x1e1   : > { %v818_v37 = vpop.f32.mrf.mxu1 }
 0x1ea   : > { %v791_v20 = vpop.f32.mrf.mxu0 }
 0x1eb   : > { %v792_v21 = vadd.f32 %v1307_v19, %v791_v20 }
 0x1ed   : > { %795 = vst.msk [vmem:[%s1958_s0] sm:$0xff] %vm794_vm3, %v792_v21 }
 0x1ef   : > { %v843_v39 = vpop.f32.mrf.mxu2 }
 0x1f0   : > { %v844_v40 = vadd.f32 %v843_v39, %v818_v37 }
 0x1f2   : > { %v850_v41 = vadd.f32 %v1304_v38, %v844_v40 }
 0x1f4   : > { %1309 = vtanh.f32 %v850_v41 }
 0x1fa   : > { %v1310_v42 = vpop.eup %1309 }
 0x1fb   : > { %1175 = vmatmul.msk.f32.vlgmr.msra.gmra.mxu3 %vm864_vm5, %v1310_v42 }
 0x27e   : > { %v885_v44 = vpop.f32.mrf.mxu3 }
 0x27f   : > { %v886_v45 = vadd.f32 %v1305_v43, %v885_v44 }
 0x281   : > { %v1176_v46 = vmul.f32 -1.442695, %v886_v45 }
 0x283   : > { %1311 = vpow2.f32 %v1176_v46 }
 0x289   : > { %v1312_v49 = vpop.eup %1311 }
 0x28a   : > { %v891_v50 = vadd.f32 1.0, %v1312_v49 }
 0x28c   : > { %1313 = vrcp.f32 %v891_v50  ;;  %v903_v54 = vand.u32 2147483648, %v891_v50  ;;  %v901_v56 = vand.u32 2147483647, %v891_v50  ;;  %vm897_vm7 = vweird.f32 %v891_v50 }
 0x28e   : > { %v904_v58 = vor.u32 1.1754944e-38, %v903_v54  ;;  %vm902_vm9 = vcmp.eq.f32.partialorder %v901_v56, 8.507059e+37 }
 0x292   : > { %v1314_v51 = vpop.eup %1313 }
 0x293   : > { %v893_v52 = vmul.f32 %v1314_v51, %v891_v50  ;;  %vm898_vm6 = vweird.f32 %v1314_v51 }
 0x294   : > { %vm899_vm8 = vmor %vm897_vm7, %vm898_vm6 }
 0x295   : > { %v894_v53 = vsub.f32 1.0, %v893_v52 }
 0x297   : > { %v895_v55 = vmul.f32 %v1314_v51, %v894_v53 }
 0x299   : > { %v896_v57 = vadd.f32 %v1314_v51, %v895_v55 }
 0x29b   : > { %v900_v59 = vsel %vm899_vm8, %v1314_v51, %v896_v57 }
 0x29c   : > { %v1807_v60 = vsel %vm902_vm9, %v904_v58, %v900_v59 }
 0x29d   : > { %908 = vrot.lane.b32.xlu0 %v1807_v60, %s1510_s29  ;;  %s1959_s29 = sand.u32 1, %s1475_s28  }
 0x2a5   : > { %915 = vrot.lane.b32.xlu0 %v818_v37, %s1511_s5  ;;  %s1014_s5 = scalar_lea.sflag [#allocation6], %s1959_s29 }
 0x30f   : > { %v909_v61 = vpop.permute.xlu0 %908 }
 0x310   : > { %v911_v62 = vmul.f32 %v1503_v11, %v909_v61 }
 0x312   : > { %1177 = vmatmul.msk.f32.vlgmr.msrb.gmra.mxu1 %vm770_vm4, %v911_v62 }
 0x317   : > { %v916_v14 = vpop.permute.xlu0 %915 }
 0x38f   : > { %v938_v15 = vpop.f32.mrf.mxu1 }
 0x390   : > { %v939_v16 = vadd.f32 %v938_v15, %v916_v14 }
 0x392   : > { %v945_v17 = vadd.f32 %v1306_v13, %v939_v16 }
 0x394   : > { %1315 = vtanh.f32 %v945_v17 }
 0x39a   : > { %v1316_v18 = vpop.eup %1315 }
 0x39b   : > { %1178 = vmatmul.msk.f32.vlgmr.msrb.gmra.mxu0 %vm955_vm10, %v1316_v18 }
 0x39c   : > { %1386 = shalt.err (!%p1383_p12)
}
 0x39d   : > { %1194 = dma.vmem_to_hbm [thread:$0]  (%p1668_p5), %s1027_s14, 128, %s1029_s20, %s1014_s5   ;;  %v988_v22 = vpop.xlane.xlu1 %987  ;;  %v1000_v24 = vpop.permute.xlu2 %999  ;;  %v1513_v25 = vmov 0.0   ;;  %v979_v28 = vsub.f32 1.0, %v1807_v60  ;;  %v981_v31 = vmul.f32 %v1503_v11, %v1807_v60 }
 0x39e   : > { %vm989_vm11 = vcmp.gt.f32.partialorder %v988_v22, 0.0  ;;  %s1960_s19 = sld [smem:[#allocation30_spill]]  ;;  %s1514_s1 = smov [#allocation11]  }
 0x39f   : > { %v1179_v26 = vsel %vm989_vm11, 1.0, %v1513_v25  ;;  %s1038_s14 = sshll.u32 %s1514_s1, 4  ;;  %s1961_s29 = sld [smem:[#allocation34_spill]]  ;;  %s1039_s14 = int_to_ptr.vmem [resolvable:$true] %s1038_s14 }
 0x3a0   : > { %v993_v30 = vsub.f32 1.0, %v1179_v26 }
 0x3a2   : > { %v994_v34 = vmul.f32 %v1503_v11, %v993_v30 }
 0x3a4   : > { %v1308_v23 = vld [vmem:[%s1960_s19] ss:$0 sm:$0xff] }
 0x3a5   : > { %v1007_v36 = vpop.permute.xlu2 %1006  ;;  %s1040_s5 = sshll.u32 %s1961_s29, 4  ;;  %s1041_s5 = int_to_ptr.hbm [resolvable:$true] %s1040_s5 }
 0x3a6   : > { %v1009_v38 = vmul.f32 %v1503_v11, %v1007_v36 }
 0x418   : > { %v976_v27 = vpop.f32.mrf.mxu0 }
 0x419   : > { %v977_v29 = vadd.f32 %v1308_v23, %v976_v27 }
 0x41b   : > { %v980_v32 = vmul.f32 %v979_v28, %v977_v29 }
 0x41d   : > { %v982_v33 = vadd.f32 %v981_v31, %v980_v32 }
 0x41f   : > { %v992_v35 = vmul.f32 %v1179_v26, %v982_v33 }
 0x421   : > { %v995_v37 = vadd.f32 %v994_v34, %v992_v35 }
 0x423   : > { %v1002_v39 = vmul.f32 %v1000_v24, %v995_v37 }
 0x425   : > { %v1010_v40 = vadd.f32 %v1009_v38, %v1002_v39 }
 0x427   : > { %1011 = vst.msk [vmem:[#allocation2] sm:$0xff] %vm770_vm4, %v1010_v40 }
 0x428   : > { %1012 = vst.msk [vmem:[#allocation11] sm:$0xff] %vm770_vm4, %v1010_v40 }
 0x429   : > { %1196 = dma.vmem_to_hbm [thread:$0]  (%p473_p2), %s1039_s14, 128, %s1041_s5, [#allocation12]  }
 0x42a   : > { %1462 = dma.done.wait (%p473_p2), [#allocation12], 128  }
 0x42b   : > { %1464 = vsyncadd (%p473_p2), [#allocation12], 4294967168 }
 0x42c PF: > { %s1962_s22 = sld [smem:[#allocation20_spill]] }
 0x42d   : > { %s1963_s23 = sld [smem:[#allocation18_spill]] }
 0x432   : > { %p1217_p5 = scmp.ge.s32.totalorder %s1962_s22, 2 }
 0x433   : > { %s1057_s2 = sand.u32 1, %s1963_s23  }
 0x434   : > { %p1208_p13 = pnand %p1217_p5, %p1672_p6  ;;  %s1058_s26 = scalar_lea.sflag [#allocation6], %s1057_s2 }
 0x436   : > { %p1209_p0 = pneg %p1208_p13 }
 0x438   : > { %1466 = dma.done.wait (%p1209_p0), %s1058_s26, 128  }
 0x439   : > { %1468 = vsyncadd (%p1209_p0), %s1058_s26, 4294967168  ;;  %s1965_s0 = sld [smem:[#allocation21_spill]]  ;;  %s1968_s3 = smov %s1475_s28 }
 0x43a   : > { %s1966_s27 = sld [smem:[#allocation19_spill]] }
 0x43b   : > { %s1967_s29 = sld [smem:[#allocation22_spill]] }
 0x43f   : > { %p43_p1 = scmp.ge.s32.totalorder %s1965_s0, 8  }
 0x440   : > { %s1969_s28 = smov %s1966_s27 }
 0x441   :  { %45 = sbr.rel (!%p43_p1) target bundleno = 29 (0x1d), region = 173 }
 0x446   :  { %1064 = vsyncpa [#allocation6], 1 }
 0x447   :  { %1066 = vsyncpa [#allocation6 + $0x1], 1 }
 0x448   :  { %1067 = vsyncpa [#allocation12], 1 }
 0x449   :  { %1068 = vsyncpa [#allocation7], 1 }
 0x44a   :  { %1070 = vsyncpa [#allocation7 + $0x1], 1 }
 0x44b   :  { %1071 = vsyncpa [#allocation9], 1 }

</bundles_post_ra>
